<compile_context>
chip_gen: v6e
topology: v6e:2x2x1
jax: 0.10.0
libtpu: 0.0.40
codegen_flags: <defaults>
</compile_context>

<pallas_src>
import functools
import math

import jax
import jax.numpy as jnp
import numpy as np
from jax.experimental import pallas as pl
from jax.experimental.pallas import tpu as pltpu


def _cal_iou_kernel(logits_ref, targets_ref, preds_ref, sums_ref, *,
                    logit_threshold):
    """Processes one (rows_tile, 128) chunk of one sample.

    sums_ref is (3, 8, 128): [0]=sum(pred*target), [1]=sum(pred),
    [2]=sum(target), accumulated lane/sublane-wise across the chunk axis.
    """
    j = pl.program_id(1)

    @pl.when(j == 0)
    def _():
        sums_ref[...] = jnp.zeros_like(sums_ref)

    x = logits_ref[...].astype(jnp.float32)      # (R, 128)
    t = targets_ref[...].astype(jnp.float32)     # (R, 128)

    # Monotone-equivalent to sigmoid(x) >= threshold; single vcmp, no EUP.
    preds = (x >= logit_threshold).astype(jnp.float32)
    preds_ref[...] = preds.astype(preds_ref.dtype)

    r = preds.shape[0]                           # static, multiple of 8
    # Pure VPU vreg adds (reshape is tile-aligned, no layout change); the
    # final cross-lane/sublane reduce is deferred to the wrapper epilogue.
    inter = (preds * t).reshape(r // 8, 8, 128).sum(axis=0)   # (8, 128)
    psum = preds.reshape(r // 8, 8, 128).sum(axis=0)
    tsum = t.reshape(r // 8, 8, 128).sum(axis=0)

    sums_ref[0] += inter
    sums_ref[1] += psum
    sums_ref[2] += tsum


def cal_iou(logits, targets, threshold=0.5, smooth=0.001, max_rows_tile=4096):
    """Returns (iou_sum_scalar, preds) matching CalIOU.forward semantics."""
    orig_shape = logits.shape
    n = orig_shape[0]
    d = int(np.prod(orig_shape[1:]))

    # sigmoid(x) >= th  <=>  x >= logit(th)   for th in (0, 1).
    if threshold <= 0.0:
        logit_th = -math.inf
    elif threshold >= 1.0:
        logit_th = math.inf
    else:
        logit_th = float(math.log(threshold / (1.0 - threshold)))

    # Lane/sublane-dense view: pad flattened D up to rows_padded * 128, with
    # rows_padded a multiple of rows_tile (itself a multiple of 8).
    rows = -(-d // 128)
    rows8 = -(-rows // 8) * 8
    if rows8 <= max_rows_tile:
        rows_tile = rows8
        rows_padded = rows8
    else:
        rows_tile = max_rows_tile                       # multiple of 8
        rows_padded = -(-rows8 // rows_tile) * rows_tile
    d_padded = rows_padded * 128

    logits2d = logits.reshape(n, d)
    targets2d = targets.reshape(n, d)
    if d_padded != d:
        pad = d_padded - d
        # -inf logits -> pred 0; 0 targets -> zero contribution to all sums.
        logits2d = jnp.pad(logits2d, ((0, 0), (0, pad)),
                           constant_values=-jnp.inf)
        targets2d = jnp.pad(targets2d, ((0, 0), (0, pad)))

    logits3d = logits2d.reshape(n, rows_padded, 128)
    targets3d = targets2d.reshape(n, rows_padded, 128)

    num_chunks = rows_padded // rows_tile
    grid = (n, num_chunks)

    kernel = functools.partial(_cal_iou_kernel, logit_threshold=logit_th)

    # rows_tile<=4096 keeps the double-buffered working set (~12 MiB for f32
    # inputs) within the default scoped-VMEM budget on v5e/v6e/v7x.
    preds3d, sums = pl.pallas_call(
        kernel,
        out_shape=(
            jax.ShapeDtypeStruct((n, rows_padded, 128), logits.dtype),  # preds
            jax.ShapeDtypeStruct((n, 3, 8, 128), jnp.float32),          # sums
        ),
        grid_spec=pltpu.PrefetchScalarGridSpec(
            num_scalar_prefetch=0,
            grid=grid,
            in_specs=[
                pl.BlockSpec((None, rows_tile, 128), lambda i, j: (i, j, 0)),
                pl.BlockSpec((None, rows_tile, 128), lambda i, j: (i, j, 0)),
            ],
            out_specs=[
                pl.BlockSpec((None, rows_tile, 128), lambda i, j: (i, j, 0)),
                pl.BlockSpec((None, 3, 8, 128), lambda i, j: (i, 0, 0, 0)),
            ],
        ),
        compiler_params=pltpu.CompilerParams(
            dimension_semantics=("parallel", "arbitrary")),
    )(logits3d, targets3d)

    # Tiny epilogue: deferred cross-lane/sublane reduce + IoU formula.
    inter = sums[:, 0].sum(axis=(-2, -1))
    psum = sums[:, 1].sum(axis=(-2, -1))
    tsum = sums[:, 2].sum(axis=(-2, -1))
    iou = jnp.sum(2.0 * (inter + smooth) / (psum + tsum + smooth))

    preds = preds3d.reshape(n, d_padded)[:, :d].reshape(orig_shape)
    return iou, preds


def _cal_iou_reference(logits, targets, threshold=0.5, smooth=0.001):
    n = logits.shape[0]
    preds = jnp.where(jax.nn.sigmoid(logits) >= threshold, 1.0, 0.0)
    m1 = preds.reshape(n, -1)
    m2 = targets.reshape(n, -1).astype(jnp.float32)
    inter = (m1 * m2).sum(axis=1)
    iou = 2.0 * (inter + smooth) / (m1.sum(axis=1) + m2.sum(axis=1) + smooth)
    return iou.sum(), preds


if __name__ == "__main__":
    key = jax.random.PRNGKey(0)
    k1, k2 = jax.random.split(key)

    N, C, H, W = 2, 4, 16, 16
    logits = jax.random.normal(k1, (N, C, H, W), dtype=jnp.float32)
    targets = jax.random.bernoulli(k2, 0.5, (N, C, H, W)).astype(jnp.float32)

    iou, preds = cal_iou(logits, targets, threshold=0.5)
    iou = jax.block_until_ready(iou)
    preds = jax.block_until_ready(preds)

    iou_ref, preds_ref = _cal_iou_reference(logits, targets, threshold=0.5)
    assert np.allclose(np.asarray(iou), np.asarray(iou_ref), rtol=1e-5, atol=1e-5)
    assert np.array_equal(np.asarray(preds), np.asarray(preds_ref))

    print("KERNEL_OK")
</pallas_src>

<mosaic_0001>
module attributes {stable_mosaic.version = 11 : i64} {
  func.func @_cal_iou_kernel(%arg0: i32, %arg1: i32, %arg2: memref<1x8x128xf32, #tpu.memory_space<vmem>>, %arg3: memref<1x8x128xf32, #tpu.memory_space<vmem>>, %arg4: memref<1x8x128xf32, #tpu.memory_space<vmem>>, %arg5: memref<1x3x8x128xf32, #tpu.memory_space<vmem>>) attributes {dimension_semantics = [#tpu.dimension_semantics<parallel>, #tpu.dimension_semantics<arbitrary>], iteration_bounds = array<i64: 2, 1>, scalar_prefetch = 0 : i64, scratch_operands = 0 : i64, tpu.core_type = #tpu.core_type<tc>, window_params = [{transform_indices = @transform_0, window_bounds = array<i64: 1, 8, 128>}, {transform_indices = @transform_1, window_bounds = array<i64: 1, 8, 128>}, {transform_indices = @transform_2, window_bounds = array<i64: 1, 8, 128>}, {transform_indices = @transform_3, window_bounds = array<i64: 1, 3, 8, 128>}]} {
    %c0_i32 = arith.constant 0 : i32
    %0 = arith.cmpi eq, %arg1, %c0_i32 : i32
    %1 = arith.extui %0 : i1 to i32
    %c0_i32_0 = arith.constant 0 : i32
    %2 = arith.cmpi ne, %1, %c0_i32_0 : i32
    scf.if %2 {
      %cst_34 = arith.constant 0.000000e+00 : f32
      %39 = vector.broadcast %cst_34 : f32 to vector<3x8x128xf32>
      %c0_35 = arith.constant 0 : index
      %c0_36 = arith.constant 0 : index
      %c0_37 = arith.constant 0 : index
      %c0_38 = arith.constant 0 : index
      %40 = vector.load %arg5[%c0_35, %c0_36, %c0_37, %c0_38] : memref<1x3x8x128xf32, #tpu.memory_space<vmem>>, vector<1x3x8x128xf32>
      %41 = vector.shape_cast %40 : vector<1x3x8x128xf32> to vector<3x8x128xf32>
      %42 = vector.shape_cast %39 : vector<3x8x128xf32> to vector<1x3x8x128xf32>
      tpu.vector_store %arg5[%c0_35, %c0_36, %c0_37, %c0_38], %42 {strides = array<i32>} : memref<1x3x8x128xf32, #tpu.memory_space<vmem>>, vector<1x3x8x128xf32>,
    } else {
    }
    %c0 = arith.constant 0 : index
    %c0_1 = arith.constant 0 : index
    %c0_2 = arith.constant 0 : index
    %3 = vector.load %arg2[%c0, %c0_1, %c0_2] : memref<1x8x128xf32, #tpu.memory_space<vmem>>, vector<1x8x128xf32>
    %4 = vector.shape_cast %3 : vector<1x8x128xf32> to vector<8x128xf32>
    %c0_3 = arith.constant 0 : index
    %c0_4 = arith.constant 0 : index
    %c0_5 = arith.constant 0 : index
    %5 = vector.load %arg3[%c0_3, %c0_4, %c0_5] : memref<1x8x128xf32, #tpu.memory_space<vmem>>, vector<1x8x128xf32>
    %6 = vector.shape_cast %5 : vector<1x8x128xf32> to vector<8x128xf32>
    %cst = arith.constant 0.000000e+00 : f32
    %7 = vector.broadcast %cst : f32 to vector<8x128xf32>
    %8 = arith.cmpf oge, %4, %7 : vector<8x128xf32>
    %9 = arith.extui %8 : vector<8x128xi1> to vector<8x128xi32>
    %10 = arith.sitofp %9 : vector<8x128xi32> to vector<8x128xf32>
    %c0_6 = arith.constant 0 : index
    %c0_7 = arith.constant 0 : index
    %c0_8 = arith.constant 0 : index
    %11 = vector.load %arg4[%c0_6, %c0_7, %c0_8] : memref<1x8x128xf32, #tpu.memory_space<vmem>>, vector<1x8x128xf32>
    %12 = vector.shape_cast %11 : vector<1x8x128xf32> to vector<8x128xf32>
    %13 = vector.shape_cast %10 : vector<8x128xf32> to vector<1x8x128xf32>
    tpu.vector_store %arg4[%c0_6, %c0_7, %c0_8], %13 {strides = array<i32>} : memref<1x8x128xf32, #tpu.memory_space<vmem>>, vector<1x8x128xf32>,
    %14 = arith.mulf %10, %6 : vector<8x128xf32>
    %15 = vector.shape_cast %14 : vector<8x128xf32> to vector<1x8x128xf32>
    %cst_9 = arith.constant dense<0.000000e+00> : vector<8x128xf32>
    %16 = vector.multi_reduction <add>, %15, %cst_9 [0] : vector<1x8x128xf32> to vector<8x128xf32>
    %17 = vector.shape_cast %10 : vector<8x128xf32> to vector<1x8x128xf32>
    %cst_10 = arith.constant dense<0.000000e+00> : vector<8x128xf32>
    %18 = vector.multi_reduction <add>, %17, %cst_10 [0] : vector<1x8x128xf32> to vector<8x128xf32>
    %19 = vector.shape_cast %6 : vector<8x128xf32> to vector<1x8x128xf32>
    %cst_11 = arith.constant dense<0.000000e+00> : vector<8x128xf32>
    %20 = vector.multi_reduction <add>, %19, %cst_11 [0] : vector<1x8x128xf32> to vector<8x128xf32>
    %c0_12 = arith.constant 0 : index
    %c0_13 = arith.constant 0 : index
    %c0_14 = arith.constant 0 : index
    %c0_15 = arith.constant 0 : index
    %21 = vector.load %arg5[%c0_12, %c0_13, %c0_14, %c0_15] : memref<1x3x8x128xf32, #tpu.memory_space<vmem>>, vector<1x1x8x128xf32>
    %22 = vector.shape_cast %21 : vector<1x1x8x128xf32> to vector<8x128xf32>
    %23 = arith.addf %22, %16 : vector<8x128xf32>
    %c0_16 = arith.constant 0 : index
    %c0_17 = arith.constant 0 : index
    %c0_18 = arith.constant 0 : index
    %c0_19 = arith.constant 0 : index
    %24 = vector.load %arg5[%c0_16, %c0_17, %c0_18, %c0_19] : memref<1x3x8x128xf32, #tpu.memory_space<vmem>>, vector<1x1x8x128xf32>
    %25 = vector.shape_cast %24 : vector<1x1x8x128xf32> to vector<8x128xf32>
    %26 = vector.shape_cast %23 : vector<8x128xf32> to vector<1x1x8x128xf32>
    tpu.vector_store %arg5[%c0_16, %c0_17, %c0_18, %c0_19], %26 {strides = array<i32>} : memref<1x3x8x128xf32, #tpu.memory_space<vmem>>, vector<1x1x8x128xf32>,
    %c0_20 = arith.constant 0 : index
    %c1 = arith.constant 1 : index
    %c0_21 = arith.constant 0 : index
    %c0_22 = arith.constant 0 : index
    %27 = vector.load %arg5[%c0_20, %c1, %c0_21, %c0_22] : memref<1x3x8x128xf32, #tpu.memory_space<vmem>>, vector<1x1x8x128xf32>
    %28 = vector.shape_cast %27 : vector<1x1x8x128xf32> to vector<8x128xf32>
    %29 = arith.addf %28, %18 : vector<8x128xf32>
    %c0_23 = arith.constant 0 : index
    %c1_24 = arith.constant 1 : index
    %c0_25 = arith.constant 0 : index
    %c0_26 = arith.constant 0 : index
    %30 = vector.load %arg5[%c0_23, %c1_24, %c0_25, %c0_26] : memref<1x3x8x128xf32, #tpu.memory_space<vmem>>, vector<1x1x8x128xf32>
    %31 = vector.shape_cast %30 : vector<1x1x8x128xf32> to vector<8x128xf32>
    %32 = vector.shape_cast %29 : vector<8x128xf32> to vector<1x1x8x128xf32>
    tpu.vector_store %arg5[%c0_23, %c1_24, %c0_25, %c0_26], %32 {strides = array<i32>} : memref<1x3x8x128xf32, #tpu.memory_space<vmem>>, vector<1x1x8x128xf32>,
    %c0_27 = arith.constant 0 : index
    %c2 = arith.constant 2 : index
    %c0_28 = arith.constant 0 : index
    %c0_29 = arith.constant 0 : index
    %33 = vector.load %arg5[%c0_27, %c2, %c0_28, %c0_29] : memref<1x3x8x128xf32, #tpu.memory_space<vmem>>, vector<1x1x8x128xf32>
    %34 = vector.shape_cast %33 : vector<1x1x8x128xf32> to vector<8x128xf32>
    %35 = arith.addf %34, %20 : vector<8x128xf32>
    %c0_30 = arith.constant 0 : index
    %c2_31 = arith.constant 2 : index
    %c0_32 = arith.constant 0 : index
    %c0_33 = arith.constant 0 : index
    %36 = vector.load %arg5[%c0_30, %c2_31, %c0_32, %c0_33] : memref<1x3x8x128xf32, #tpu.memory_space<vmem>>, vector<1x1x8x128xf32>
    %37 = vector.shape_cast %36 : vector<1x1x8x128xf32> to vector<8x128xf32>
    %38 = vector.shape_cast %35 : vector<8x128xf32> to vector<1x1x8x128xf32>
    tpu.vector_store %arg5[%c0_30, %c2_31, %c0_32, %c0_33], %38 {strides = array<i32>} : memref<1x3x8x128xf32, #tpu.memory_space<vmem>>, vector<1x1x8x128xf32>,
    return
  }
  func.func @transform_0(%arg0: i32, %arg1: i32) -> (i32, i32, i32) {
    %c0_i32 = arith.constant 0 : i32
    %c0_i32_0 = arith.constant 0 : i32
    return %arg0, %arg1, %c0_i32 : i32, i32, i32
  }
  func.func @transform_1(%arg0: i32, %arg1: i32) -> (i32, i32, i32) {
    %c0_i32 = arith.constant 0 : i32
    %c0_i32_0 = arith.constant 0 : i32
    return %arg0, %arg1, %c0_i32 : i32, i32, i32
  }
  func.func @transform_2(%arg0: i32, %arg1: i32) -> (i32, i32, i32) {
    %c0_i32 = arith.constant 0 : i32
    %c0_i32_0 = arith.constant 0 : i32
    return %arg0, %arg1, %c0_i32 : i32, i32, i32
  }
  func.func @transform_3(%arg0: i32, %arg1: i32) -> (i32, i32, i32, i32) {
    %c0_i32 = arith.constant 0 : i32
    %c0_i32_0 = arith.constant 0 : i32
    %c0_i32_1 = arith.constant 0 : i32
    %c0_i32_2 = arith.constant 0 : i32
    return %arg0, %c0_i32, %c0_i32_0, %c0_i32_1 : i32, i32, i32, i32
  }
}

</mosaic_0001>

<bundles_post_ra>
// kernel: tpu_custom_call.1
= control target key start
LH: loop header
LB: loop body
LE: loop exit
PB: predicated region body
PF: predicated region fallthrough
CT: control target
= control target key end

     0   :  { %9 = vsyncpa [#allocation3], 0  ;;  %s965_s0 = inlined_call_operand.hbm [shape: f32[2,8,128], index: 0, kind: input, shape index: {}]   ;;  %s966_s1 = inlined_call_operand.hbm [shape: f32[2,8,128], index: 1, kind: input, shape index: {}]   ;;  %s967_s2 = inlined_call_operand.hbm [shape: f32[2,8,128], index: 2, kind: output, shape index: {0}]   ;;  %s968_s3 = inlined_call_operand.hbm [shape: f32[2,3,8,128], index: 3, kind: output, shape index: {1}]  }
   0x1   :  { %11 = vsyncpa [#allocation3 + $0x1], 0 }
   0x2   :  { %12 = vsyncpa [#allocation6], 0 }
   0x3   :  { %14 = vsyncpa [#allocation6 + $0x1], 0 }
   0x4   :  { %15 = vsyncpa [#allocation4], 0 }
   0x5   :  { %17 = vsyncpa [#allocation4 + $0x1], 0 }
   0x6   :  { %18 = vsyncpa [#allocation9], 0 }
   0x7   :  { %20 = vsyncpa [#allocation9 + $0x1], 0  ;;  %s752_s12 = smov 0   ;;  %s754_s13 = smov 0  }
   0x8   :  { %s756_s14 = smov 0   ;;  %s758_s15 = smov 0  }
   0x9   :  { %s760_s16 = smov 0   ;;  %s762_s17 = smov 0  }
   0xa LB: > { %s454_s18 = sadd.s32 4294967295, %s723_s17   ;;  %s455_s19 = sadd.s32 4294967294, %s723_s17   ;;  %s723_s17 = sphi %s762_s17, %s26_s17   ;;  %s719_s16 = sphi %s760_s16, %s980_s16   ;;  %s715_s15 = sphi %s758_s15, %s979_s15   ;;  %s711_s14 = sphi %s756_s14, %s978_s14   ;;  %s707_s13 = sphi %s754_s13, %s977_s13   ;;  %s703_s12 = sphi %s752_s12, %s976_s12  }
   0xb   : > { %s38_s20 = sadd.s32 1, %s719_s16  ;;  %s47_s21 = sadd.s32 1, %s711_s14 }
   0xc   : > { %p40_p0 = scmp.ge.s32.totalorder %s38_s20, 2  ;;  %p54_p1 = scmp.ne.s32.totalorder %s711_s14, %s707_s13 }
   0xd   : > { %p55_p2 = scmp.eq.s32.totalorder %s723_s17, 0  ;;  %p60_p3 = scmp.ne.s32.totalorder %s707_s13, %s703_s12 }
   0xe   : > { %s982_s20 = smov (%p40_p0, %s38_s20), 0  ;;  %p61_p5 = scmp.eq.s32.totalorder %s454_s18, 0 }
   0xf   : > { %p793_p4 = por %p55_p2, %p54_p1  ;;  %s42_s23 = ssub.s32 %s719_s16, %s982_s20 }
  0x10   : > { %p114_p6 = scmp.eq.s32.totalorder %s454_s18, 1  ;;  %p45_p7 = scmp.eq.s32.totalorder %s42_s23, 0 }
  0x11   : > { %p799_p8 = por %p61_p5, %p60_p3  ;;  %p120_p10 = scmp.eq.s32.totalorder %s455_s19, 1 }
  0x12   : > { %p803_p9 = por %p114_p6, %p54_p1  ;;  %p500_p13 = scmp.lt.s32.totalorder %s723_s17, 2 }
  0x13   : > { %s808_s26 = scalar_select %p45_p7, %s711_s14, %s47_s21  }
  0x14   : > { %p810_p11 = por %p120_p10, %p60_p3  ;;  %s817_s28 = sand.u32 1, %s711_s14  }
  0x15   : > { %s458_s29 = sshll.u32 %s817_s28, 3  ;;  %s459_s30 = sshll.u32 %s719_s16, 7 }
  0x16   : > { %s176_s6 = scalar_lea.hbm %s965_s0, %s459_s30  ;;  %s170_s7 = scalar_lea.vmem [#allocation2], %s458_s29 }
  0x17   : > { %s178_s8 = sshll.u32 %s170_s7, 4  ;;  %p826_p0 = pnand %p500_p13, %p793_p4  ;;  %s179_s8 = int_to_ptr.vmem [resolvable:$true] %s178_s8 }
  0x18   : > { %p462_p1 = scmp.ge.s32.totalorder %s723_s17, 1  ;;  %p202_p2 = scmp.lt.s32.totalorder %s723_s17, 3 }
  0x19   : > { %s167_s10 = scalar_lea.sflag [#allocation3], %s817_s28  ;;  %p555_p3 = pneg %p826_p0 }
  0x1a   : > { %s566_s11 = scalar_lea.vmem %s179_s8, 128  ;;  %s725_s18 = smov [#allocation2]  }
  0x1b   : > { %p567_p5 = scmp.ne.s32.totalorder %s179_s8, %s566_s11  ;;  %s571_s19 = sshll.u32 %s725_s18, 4  ;;  %s572_s19 = int_to_ptr.vmem [resolvable:$false] %s571_s19 }
  0x1c   : > { %s573_s21 = scalar_lea.vmem %s572_s19, 256  ;;  %p574_p4 = scmp.lt.s32.totalorder %s179_s8, %s572_s19 }
  0x1d   : > { %p569_p6 = pnand %p567_p5, %p555_p3  ;;  %p575_p10 = scmp.lt.s32.totalorder %s573_s21, %s566_s11 }
  0x1f   : > { %p570_p7 = pneg %p569_p6  ;;  %p576_p13 = por %p575_p10, %p574_p4 }
  0x21   : > { %p577_p12 = pnand %p576_p13, %p570_p7 }
  0x23   : > { %580 = shalt.err (!%p577_p12)
}
  0x24   : > { %489 = dma.hbm_to_vmem [thread:$0]  (!%p826_p0), %s176_s6, 128, %s179_s8, %s167_s10  }
  0x25   : > { %p844_p5 = pnand %p462_p1, %p202_p2  ;;  %s195_s5 = scalar_lea.hbm %s966_s1, %s459_s30 }
  0x26   : > { %s189_s7 = scalar_lea.vmem [#allocation5], %s458_s29  ;;  %s186_s18 = scalar_lea.sflag [#allocation6], %s817_s28 }
  0x27   : > { %s197_s11 = sshll.u32 %s189_s7, 4  ;;  %s726_s6 = smov [#allocation5]   ;;  %s198_s11 = int_to_ptr.vmem [resolvable:$true] %s197_s11 }
  0x28   : > { %s594_s19 = scalar_lea.vmem %s198_s11, 128  ;;  %s599_s8 = sshll.u32 %s726_s6, 4  ;;  %s600_s8 = int_to_ptr.vmem [resolvable:$false] %s599_s8 }
  0x29   : > { %p595_p12 = scmp.ne.s32.totalorder %s198_s11, %s594_s19  ;;  %s601_s10 = scalar_lea.vmem %s600_s8, 256 }
  0x2a   : > { %p602_p1 = scmp.lt.s32.totalorder %s198_s11, %s600_s8  ;;  %p603_p2 = scmp.lt.s32.totalorder %s601_s10, %s594_s19 }
  0x2b   : > { %p597_p6 = pnand %p595_p12, %p555_p3 }
  0x2c   : > { %p604_p4 = por %p603_p2, %p602_p1 }
  0x2d   : > { %p598_p7 = pneg %p597_p6 }
  0x2f   : > { %p605_p10 = pnand %p604_p4, %p598_p7 }
  0x31   : > { %608 = shalt.err (!%p605_p10)
}
  0x32   : > { %492 = dma.hbm_to_vmem [thread:$0]  (!%p826_p0), %s195_s5, 128, %s198_s11, %s186_s18  }
  0x33   : > { %206 = sbr.rel (%p844_p5) target bundleno = 108 (0x6c), region = 28  ;;  %s860_s28 = sand.u32 (!%p844_p5), 1, %s707_s13  }
  0x34   : > { %s463_s29 = sshll.u32 (!%p844_p5), %s860_s28, 3  ;;  %s209_s30 = scalar_lea.sflag (!%p844_p5), [#allocation3], %s860_s28 }
  0x35   : > { %s212_s21 = scalar_lea.vmem (!%p844_p5), [#allocation2], %s463_s29 }
  0x38   : > { %686 = dma.done.wait (%p799_p8), %s209_s30, 128  }
  0x39   : > { %688 = vsyncadd (%p799_p8), %s209_s30, 4294967168  ;;  %s218_s9 = scalar_lea.sflag [#allocation6], %s860_s28  ;;  %s221_s23 = scalar_lea.vmem [#allocation5], %s463_s29 }
  0x3a   : > { %690 = dma.done.wait (%p799_p8), %s218_s9, 128  }
  0x3b   : > { %692 = vsyncadd (%p799_p8), %s218_s9, 4294967168  ;;  %s476_s22 = smul.u32 24, %s860_s28  ;;  %s246_s4 = scalar_lea.vmem [#allocation7], %s463_s29  ;;  %v261_v0 = vld [vmem:[%s212_s21] sm:$0xff]  ;;  %v262_v1 = vld [vmem:[%s221_s23] sm:$0xff]  ;;  %v727_v2 = vmov 0.0  }
  0x3c   : > { %s302_s5 = sshll.u32 %s246_s4, 4  ;;  %s472_s7 = sshll.u32 %s715_s15, 7  ;;  %vm263_vm0 = vcmp.ge.f32.partialorder %v261_v0, 0.0  ;;  %s876_s5 = int_to_ptr.vmem [resolvable:$true] %s302_s5 }
  0x3d   : > { %s477_s11 = smul.u32 384, %s715_s15  ;;  %s881_s24 = scalar_lea.hbm %s967_s2, %s472_s7  ;;  %v466_v3 = vsel %vm263_vm0, 1.0, %v727_v2 }
  0x3e   : > { %s883_s6 = scalar_lea.vmem [#allocation8], %s476_s22  ;;  %266 = vst [vmem:[%s246_s4] sm:$0xff] %v466_v3  ;;  %v267_v4 = vmul.f32 %v466_v3, %v262_v1  ;;  %s283_s30 = scalar_lea.sflag [#allocation4], %s860_s28 }
  0x3f   : > { %s315_s15 = sshll.u32 %s883_s6, 4  ;;  %470 = vst [vmem:[%s883_s6 + $0x10] sm:$0xff] %v262_v1  ;;  %s890_s29 = scalar_lea.hbm %s968_s3, %s477_s11  ;;  %s916_s15 = int_to_ptr.vmem [resolvable:$true] %s315_s15 }
  0x40   : > { %s609_s21 = scalar_lea.vmem %s876_s5, 128  ;;  %s728_s9 = smov [#allocation7]  }
  0x41   : > { %p610_p8 = scmp.ne.s32.totalorder %s876_s5, %s609_s21  ;;  %s613_s23 = sshll.u32 %s728_s9, 4  ;;  %s614_s23 = int_to_ptr.vmem [resolvable:$false] %s613_s23 }
  0x42   : > { %s615_s22 = scalar_lea.vmem %s614_s23, 256  ;;  %p616_p13 = scmp.lt.s32.totalorder %s876_s5, %s614_s23 }
  0x43   : > { %p611_p0 = pnand %p610_p8, %p803_p9  ;;  %p617_p5 = scmp.lt.s32.totalorder %s615_s22, %s609_s21 }
  0x45   : > { %p612_p3 = pneg %p611_p0  ;;  %p618_p12 = por %p617_p5, %p616_p13 }
  0x47   : > { %p619_p6 = pnand %p618_p12, %p612_p3 }
  0x49   : > { %622 = shalt.err (!%p619_p6)
}
  0x4a   : > { %s623_s4 = scalar_lea.hbm %s881_s24, 128  ;;  %s627_s18 = scalar_lea.hbm %s967_s2, 256 }
  0x4b   : > { %p624_p7 = scmp.ne.s32.totalorder %s881_s24, %s623_s4  ;;  %p628_p4 = scmp.lt.s32.totalorder %s881_s24, %s967_s2 }
  0x4c   : > { %p629_p10 = scmp.lt.s32.totalorder %s627_s18, %s623_s4 }
  0x4d   : > { %p625_p1 = pnand %p624_p7, %p803_p9 }
  0x4e   : > { %p630_p8 = por %p629_p10, %p628_p4 }
  0x4f   : > { %p626_p2 = pneg %p625_p1 }
  0x51   : > { %p631_p0 = pnand %p630_p8, %p626_p2 }
  0x53   : > { %634 = shalt.err (!%p631_p0)
}
  0x54   : > { %482 = dma.vmem_to_hbm [thread:$0]  (%p803_p9), %s876_s5, 128, %s881_s24, %s283_s30   ;;  %468 = vst [vmem:[%s883_s6 + $0x8] sm:$0xff] %v466_v3  ;;  %273 = vst [vmem:[%s883_s6] sm:$0xff] %v267_v4 }
  0x55   : > { %s288_s10 = scalar_lea.sflag [#allocation9], %s860_s28  ;;  %s635_s21 = scalar_lea.vmem %s916_s15, 384 }
  0x56   : > { %p636_p3 = scmp.ne.s32.totalorder %s916_s15, %s635_s21  ;;  %s729_s9 = smov [#allocation8]  }
  0x57   : > { %s639_s23 = sshll.u32 %s729_s9, 4  ;;  %s640_s23 = int_to_ptr.vmem [resolvable:$false] %s639_s23 }
  0x58   : > { %p637_p13 = pnand %p636_p3, %p803_p9  ;;  %s641_s22 = scalar_lea.vmem %s640_s23, 768 }
  0x59   : > { %p642_p12 = scmp.lt.s32.totalorder %s916_s15, %s640_s23  ;;  %p643_p6 = scmp.lt.s32.totalorder %s641_s22, %s635_s21 }
  0x5a   : > { %p638_p5 = pneg %p637_p13 }
  0x5b   : > { %p644_p7 = por %p643_p6, %p642_p12 }
  0x5d   : > { %p645_p1 = pnand %p644_p7, %p638_p5 }
  0x5f   : > { %648 = shalt.err (!%p645_p1)
}
  0x60   : > { %s649_s5 = scalar_lea.hbm %s890_s29, 384  ;;  %s653_s30 = scalar_lea.hbm %s968_s3, 768 }
  0x61   : > { %p650_p2 = scmp.ne.s32.totalorder %s890_s29, %s649_s5  ;;  %p654_p8 = scmp.lt.s32.totalorder %s890_s29, %s968_s3 }
  0x62   : > { %p655_p0 = scmp.lt.s32.totalorder %s653_s30, %s649_s5 }
  0x63   : > { %p651_p4 = pnand %p650_p2, %p803_p9 }
  0x64   : > { %p656_p3 = por %p655_p0, %p654_p8 }
  0x65   : > { %p652_p10 = pneg %p651_p4 }
  0x67   : > { %p657_p13 = pnand %p656_p3, %p652_p10 }
  0x69   : > { %660 = shalt.err (!%p657_p13)
}
  0x6a   : > { %s730_s11 = smov 128   ;;  %s731_s18 = smov 8  }
  0x6b   : > { %483 = dma.vmem_to_hbm [thread:$0]  (%p803_p9), %s916_s15, 384, %s890_s29, %s288_s10, %s730_s11, %s730_s11, %s731_s18  }
  0x6c PF: > { %s330_s19 = sand.u32 1, %s703_s12   ;;  %p975_p5 = scmp.ge.s32.totalorder %s723_s17, 2 }
  0x6d   : > { %s331_s8 = scalar_lea.sflag [#allocation4], %s330_s19 }
  0x6e   : > { %p494_p12 = pnand %p975_p5, %p810_p11 }
  0x70   : > { %p495_p6 = pneg %p494_p12 }
  0x72   : > { %694 = dma.done.wait (%p495_p6), %s331_s8, 128  }
  0x73   : > { %696 = vsyncadd (%p495_p6), %s331_s8, 4294967168  ;;  %s340_s21 = scalar_lea.sflag [#allocation9], %s330_s19 }
  0x74   : > { %698 = dma.done.wait (%p495_p6), %s340_s21, 384  }
  0x75   : > { %700 = vsyncadd (%p495_p6), %s340_s21, 4294966912  ;;  %s26_s17 = sadd.s32 1, %s723_s17   ;;  %s976_s12 = smov %s707_s13 }
  0x76   : > { %p23_p7 = scmp.ge.s32.totalorder %s26_s17, 4   ;;  %s977_s13 = smov %s711_s14 }
  0x77   : > { %s978_s14 = smov %s808_s26  ;;  %s979_s15 = smov %s719_s16 }
  0x78   : > { %s980_s16 = smov %s982_s20  ;;  %25 = sbr.rel (!%p23_p7) target bundleno = 10 (0xa), region = 109 }
  0x7d   :  { %345 = vsyncpa [#allocation3], 1 }
  0x7e   :  { %347 = vsyncpa [#allocation3 + $0x1], 1 }
  0x7f   :  { %348 = vsyncpa [#allocation6], 1 }
  0x80   :  { %350 = vsyncpa [#allocation6 + $0x1], 1 }
  0x81   :  { %351 = vsyncpa [#allocation4], 1 }
  0x82   :  { %353 = vsyncpa [#allocation4 + $0x1], 1 }
  0x83   :  { %354 = vsyncpa [#allocation9], 1 }
  0x84   :  { %356 = vsyncpa [#allocation9 + $0x1], 1 }

</bundles_post_ra>
